<compile_context>
chip_gen: v7x
topology: tpu7x:2x2x1
jax: 0.10.0
libtpu: 0.0.40
codegen_flags: <defaults>
</compile_context>

<pallas_src>
import jax
import jax.numpy as jnp
from jax.experimental import pallas as pl
from jax.experimental.pallas import tpu as pltpu

EPS = 1e-5        # torch.nn.BatchNorm1d default eps
NEG_SLOPE = 0.1   # w_lrelu
LANE = 128        # vreg lane width / batch bucket


def _bn_lrelu(z, gamma, beta, inv_n, valid, *, mask_out):
    """Training-mode BatchNorm1d over the lane (batch) axis + LeakyReLU.

    z: (F, B_pad) with padded lanes exactly zero; gamma/beta: (F, 1).
    Two-pass (z - mean)^2 variance matches PyTorch numerics.
    """
    mean = jnp.sum(z, axis=1, keepdims=True) * inv_n          # (F, 1), exact (pads are 0)
    c = jnp.where(valid, z - mean, 0.0)                       # centered; padded lanes -> 0
    var = jnp.sum(c * c, axis=1, keepdims=True) * inv_n       # biased (training-mode) var
    scale = gamma * jax.lax.rsqrt(var + EPS)                  # EUP rsqrt on tiny (F,1) stats
    y = c * scale + beta
    y = jnp.maximum(y, NEG_SLOPE * y)                         # LeakyReLU, single VPU max
    if mask_out:
        y = jnp.where(valid, y, 0.0)                          # keep padded lanes exactly 0
    return y


def grl_classifier_kernel(n_ref, inv_n_ref, f_ref, w1_ref, g1_ref, b1_ref,
                          w2_ref, g2_ref, b2_ref, w3_ref, out_ref):
    # ReverseLayerF.forward(x, alpha) == x: identity in the forward pass.
    x = f_ref[...].astype(jnp.float32)                        # (B_pad, D_IN), native layout
    n = n_ref[0]                                              # valid batch size (SMEM)
    inv_n = inv_n_ref[0]                                      # 1 / n            (SMEM)

    b_pad = x.shape[0]
    lane_idx = jax.lax.broadcasted_iota(jnp.int32, (1, b_pad), 1)
    valid = lane_idx < n                                      # (1, B_pad) lane mask

    # Block 1: Linear(32->16, no bias) -> BN1d -> LeakyReLU.
    # Contract both operands on their LAST dim: the input transpose is absorbed
    # into the MXU operand path, producing batch-on-lanes (16, B_pad) directly.
    z1 = jax.lax.dot_general(w1_ref[...], x, (((1,), (1,)), ((), ())),
                             preferred_element_type=jnp.float32)       # (16, B_pad)
    h1 = _bn_lrelu(z1, g1_ref[...], b1_ref[...], inv_n, valid, mask_out=True)

    # Block 2: Linear(16->8, no bias) -> BN1d -> LeakyReLU.
    z2 = jnp.dot(w2_ref[...], h1, preferred_element_type=jnp.float32)  # (8, B_pad)
    h2 = _bn_lrelu(z2, g2_ref[...], b2_ref[...], inv_n, valid, mask_out=False)

    # Final classifier: Linear(8->4, no bias). Lane-dense (4, B_pad) store.
    out_ref[...] = jnp.dot(w3_ref[...], h2, preferred_element_type=jnp.float32)


def grl_classifier(f, alpha, params):
    """Forward pass of GRL_classifier.

    f: (B, D_IN) (f32 or bf16). alpha only affects the backward pass of the
    gradient-reversal layer, so it is unused here. Linear weights are in
    PyTorch layout (out_features, in_features); BN gamma/beta are per-feature
    1-D vectors.
    """
    del alpha
    w1, g1, b1, w2, g2, b2, w3 = params
    B, d_in = f.shape
    h1_dim, h2_dim, out_dim = w1.shape[0], w2.shape[0], w3.shape[0]
    if B == 0:                                  # guard: BN stats undefined for empty batch
        return jnp.zeros((0, out_dim), jnp.float32)

    # Pad only the batch dim to a lane bucket (no transpose). Zero-padded rows
    # are statistically inert because every Linear has bias=False; when B is
    # already bucketed this is a no-op.
    b_pad = pl.cdiv(B, LANE) * LANE
    f_pad = jnp.pad(f, ((0, b_pad - B), (0, 0))) if b_pad != B else f

    g1c = g1.reshape(-1, 1).astype(jnp.float32)
    b1c = b1.reshape(-1, 1).astype(jnp.float32)
    g2c = g2.reshape(-1, 1).astype(jnp.float32)
    b2c = b2.reshape(-1, 1).astype(jnp.float32)

    # SMEM scalars: one compiled executable serves any B within a bucket.
    n_smem = jnp.array([B], jnp.int32)
    inv_n_smem = jnp.array([1.0 / B], jnp.float32)

    itemsize = jnp.dtype(f.dtype).itemsize
    param_bytes = sum(int(p.size) * 4 for p in (w1, g1c, b1c, w2, g2c, b2c, w3))
    in_bytes = b_pad * d_in * itemsize
    out_bytes = out_dim * b_pad * 4
    act_bytes = (2 * h1_dim + 2 * h2_dim) * b_pad * 4          # z1/h1/z2/h2 slabs
    footprint = in_bytes + out_bytes + act_bytes + param_bytes

    # Footprint-derived VMEM budget, clamped to 3/4 of physical per-core VMEM
    # (correct on v5e/v6e's 128 MiB and v7x's 64 MiB).
    try:
        vmem_cap = int(pltpu.get_tpu_info().vmem_capacity_bytes)
    except Exception:
        vmem_cap = 64 * 1024 * 1024
    vmem_limit = min(max(2 * footprint, 8 * 1024 * 1024), (vmem_cap * 3) // 4)

    cost = pl.CostEstimate(
        flops=2 * b_pad * (d_in * h1_dim + h1_dim * h2_dim + h2_dim * out_dim),
        transcendentals=h1_dim + h2_dim,        # the two rsqrts over per-feature stats
        bytes_accessed=in_bytes + param_bytes + out_bytes,
    )

    smem = pl.BlockSpec(memory_space=pltpu.MemorySpace.SMEM)
    vmem = pl.BlockSpec(memory_space=pltpu.MemorySpace.VMEM)
    out_t = pl.pallas_call(
        grl_classifier_kernel,
        out_shape=jax.ShapeDtypeStruct((out_dim, b_pad), jnp.float32),
        in_specs=[smem, smem] + [vmem] * 8,
        out_specs=vmem,
        cost_estimate=cost,
        compiler_params=pltpu.CompilerParams(vmem_limit_bytes=int(vmem_limit)),
    )(n_smem, inv_n_smem, f_pad, w1, g1c, b1c, w2, g2c, b2c, w3)

    # TODO(synk): a consumer that accepts (out_dim, B) directly could skip this
    # 16*B-byte slice+transpose entirely.
    return jnp.transpose(out_t[:, :B])


def _lrelu_ref(x):
    return jnp.where(x > 0, x, NEG_SLOPE * x)


def _reference(f, params):
    # Pure-JAX reference (PyTorch semantics) for the correctness check.
    w1, g1, b1, w2, g2, b2, w3 = params

    def bn(h, g, b):
        m = jnp.mean(h, axis=0)
        v = jnp.mean((h - m) ** 2, axis=0)
        return (h - m) / jnp.sqrt(v + EPS) * g + b

    h = f @ w1.T
    h = _lrelu_ref(bn(h, g1, b1))
    h = h @ w2.T
    h = _lrelu_ref(bn(h, g2, b2))
    return h @ w3.T


if __name__ == "__main__":
    key = jax.random.PRNGKey(0)
    B, D_IN, H1, H2, OUT = 96, 32, 16, 8, 4   # B=96 exercises the lane-padding / mask path

    ks = jax.random.split(key, 4)
    f = jax.random.normal(ks[0], (B, D_IN), jnp.float32)
    # torch nn.Linear.weight layout: (out_features, in_features), bias=False.
    w1 = jax.random.normal(ks[1], (H1, D_IN), jnp.float32) * 0.1
    w2 = jax.random.normal(ks[2], (H2, H1), jnp.float32) * 0.1
    w3 = jax.random.normal(ks[3], (OUT, H2), jnp.float32) * 0.1
    # BatchNorm1d default init: gamma=1, beta=0 (per-feature vectors).
    g1 = jnp.ones((H1,), jnp.float32)
    b1 = jnp.zeros((H1,), jnp.float32)
    g2 = jnp.ones((H2,), jnp.float32)
    b2 = jnp.zeros((H2,), jnp.float32)

    params = (w1, g1, b1, w2, g2, b2, w3)
    alpha = 0.5

    out = grl_classifier(f, alpha, params)
    jax.block_until_ready(out)

    ref = _reference(f, params)
    assert out.shape == (B, OUT)
    assert jnp.allclose(out, ref, rtol=1e-4, atol=1e-4), float(jnp.max(jnp.abs(out - ref)))

    print("KERNEL_OK")
</pallas_src>

<mosaic_0001>
module attributes {stable_mosaic.version = 11 : i64} {
  func.func @grl_classifier_kernel(%arg0: memref<1xi32, #tpu.memory_space<smem>>, %arg1: memref<1xf32, #tpu.memory_space<smem>>, %arg2: memref<128x32xf32, #tpu.memory_space<vmem>>, %arg3: memref<16x32xf32, #tpu.memory_space<vmem>>, %arg4: memref<16x1xf32, #tpu.memory_space<vmem>>, %arg5: memref<16x1xf32, #tpu.memory_space<vmem>>, %arg6: memref<8x16xf32, #tpu.memory_space<vmem>>, %arg7: memref<8x1xf32, #tpu.memory_space<vmem>>, %arg8: memref<8x1xf32, #tpu.memory_space<vmem>>, %arg9: memref<4x8xf32, #tpu.memory_space<vmem>>, %arg10: memref<4x128xf32, #tpu.memory_space<vmem>>) attributes {dimension_semantics = [], scalar_prefetch = 0 : i64, scratch_operands = 0 : i64, tpu.core_type = #tpu.core_type<tc>} {
    %c0 = arith.constant 0 : index
    %c0_0 = arith.constant 0 : index
    %0 = vector.load %arg2[%c0, %c0_0] : memref<128x32xf32, #tpu.memory_space<vmem>>, vector<128x32xf32>
    %c0_1 = arith.constant 0 : index
    %1 = memref.load %arg0[%c0_1] : memref<1xi32, #tpu.memory_space<smem>>
    %c0_2 = arith.constant 0 : index
    %2 = memref.load %arg1[%c0_2] : memref<1xf32, #tpu.memory_space<smem>>
    %3 = tpu.iota {dimensions = array<i32: 1>} : vector<1x128xi32>
    %4 = vector.broadcast %1 : i32 to vector<1x128xi32>
    %5 = arith.cmpi slt, %3, %4 : vector<1x128xi32>
    %c0_3 = arith.constant 0 : index
    %c0_4 = arith.constant 0 : index
    %6 = vector.load %arg3[%c0_3, %c0_4] : memref<16x32xf32, #tpu.memory_space<vmem>>, vector<16x32xf32>
    %cst = arith.constant dense<0.000000e+00> : vector<16x128xf32>
    %7 = tpu.matmul %6, %0, %cst {dimension_numbers = #tpu.dot_dimension_numbers<[1], [1], [0], [0], [0, 0, 1, 0], [], []>} : vector<16x32xf32>, vector<128x32xf32>, vector<16x128xf32> -> vector<16x128xf32>
    %c0_5 = arith.constant 0 : index
    %c0_6 = arith.constant 0 : index
    %8 = vector.load %arg4[%c0_5, %c0_6] : memref<16x1xf32, #tpu.memory_space<vmem>>, vector<16x1xf32>
    %c0_7 = arith.constant 0 : index
    %c0_8 = arith.constant 0 : index
    %9 = vector.load %arg5[%c0_7, %c0_8] : memref<16x1xf32, #tpu.memory_space<vmem>>, vector<16x1xf32>
    %cst_9 = arith.constant dense<0.000000e+00> : vector<16xf32>
    %10 = vector.multi_reduction <add>, %7, %cst_9 [1] : vector<16x128xf32> to vector<16xf32>
    %11 = vector.shape_cast %10 : vector<16xf32> to vector<16x1xf32>
    %12 = vector.broadcast %2 : f32 to vector<16x1xf32>
    %13 = arith.mulf %11, %12 : vector<16x1xf32>
    %14 = vector.broadcast %13 : vector<16x1xf32> to vector<16x128xf32>
    %15 = arith.subf %7, %14 : vector<16x128xf32>
    %cst_10 = arith.constant 0.000000e+00 : f32
    %16 = vector.shape_cast %5 : vector<1x128xi1> to vector<1x128xi1>
    %17 = vector.broadcast %16 : vector<1x128xi1> to vector<16x128xi1>
    %18 = vector.broadcast %cst_10 : f32 to vector<16x128xf32>
    %19 = arith.select %17, %15, %18 : vector<16x128xi1>, vector<16x128xf32>
    %20 = arith.mulf %19, %19 : vector<16x128xf32>
    %cst_11 = arith.constant dense<0.000000e+00> : vector<16xf32>
    %21 = vector.multi_reduction <add>, %20, %cst_11 [1] : vector<16x128xf32> to vector<16xf32>
    %22 = vector.shape_cast %21 : vector<16xf32> to vector<16x1xf32>
    %23 = vector.broadcast %2 : f32 to vector<16x1xf32>
    %24 = arith.mulf %22, %23 : vector<16x1xf32>
    %cst_12 = arith.constant 9.99999974E-6 : f32
    %25 = vector.broadcast %cst_12 : f32 to vector<16x1xf32>
    %26 = arith.addf %24, %25 : vector<16x1xf32>
    %27 = math.rsqrt %26 : vector<16x1xf32>
    %28 = arith.mulf %8, %27 : vector<16x1xf32>
    %29 = vector.broadcast %28 : vector<16x1xf32> to vector<16x128xf32>
    %30 = arith.mulf %19, %29 : vector<16x128xf32>
    %31 = vector.broadcast %9 : vector<16x1xf32> to vector<16x128xf32>
    %32 = arith.addf %30, %31 : vector<16x128xf32>
    %cst_13 = arith.constant 1.000000e-01 : f32
    %33 = vector.broadcast %cst_13 : f32 to vector<16x128xf32>
    %34 = arith.mulf %33, %32 : vector<16x128xf32>
    %35 = arith.maximumf %32, %34 : vector<16x128xf32>
    %cst_14 = arith.constant 0.000000e+00 : f32
    %36 = vector.shape_cast %5 : vector<1x128xi1> to vector<1x128xi1>
    %37 = vector.broadcast %36 : vector<1x128xi1> to vector<16x128xi1>
    %38 = vector.broadcast %cst_14 : f32 to vector<16x128xf32>
    %39 = arith.select %37, %35, %38 : vector<16x128xi1>, vector<16x128xf32>
    %c0_15 = arith.constant 0 : index
    %c0_16 = arith.constant 0 : index
    %40 = vector.load %arg6[%c0_15, %c0_16] : memref<8x16xf32, #tpu.memory_space<vmem>>, vector<8x16xf32>
    %cst_17 = arith.constant dense<0.000000e+00> : vector<8x128xf32>
    %41 = tpu.matmul %40, %39, %cst_17 {dimension_numbers = #tpu.dot_dimension_numbers<[1], [0], [0], [1], [0, 0, 1, 1], [], []>} : vector<8x16xf32>, vector<16x128xf32>, vector<8x128xf32> -> vector<8x128xf32>
    %c0_18 = arith.constant 0 : index
    %c0_19 = arith.constant 0 : index
    %42 = vector.load %arg7[%c0_18, %c0_19] : memref<8x1xf32, #tpu.memory_space<vmem>>, vector<8x1xf32>
    %c0_20 = arith.constant 0 : index
    %c0_21 = arith.constant 0 : index
    %43 = vector.load %arg8[%c0_20, %c0_21] : memref<8x1xf32, #tpu.memory_space<vmem>>, vector<8x1xf32>
    %cst_22 = arith.constant dense<0.000000e+00> : vector<8xf32>
    %44 = vector.multi_reduction <add>, %41, %cst_22 [1] : vector<8x128xf32> to vector<8xf32>
    %45 = vector.shape_cast %44 : vector<8xf32> to vector<8x1xf32>
    %46 = vector.broadcast %2 : f32 to vector<8x1xf32>
    %47 = arith.mulf %45, %46 : vector<8x1xf32>
    %48 = vector.broadcast %47 : vector<8x1xf32> to vector<8x128xf32>
    %49 = arith.subf %41, %48 : vector<8x128xf32>
    %cst_23 = arith.constant 0.000000e+00 : f32
    %50 = vector.shape_cast %5 : vector<1x128xi1> to vector<1x128xi1>
    %51 = vector.broadcast %50 : vector<1x128xi1> to vector<8x128xi1>
    %52 = vector.broadcast %cst_23 : f32 to vector<8x128xf32>
    %53 = arith.select %51, %49, %52 : vector<8x128xi1>, vector<8x128xf32>
    %54 = arith.mulf %53, %53 : vector<8x128xf32>
    %cst_24 = arith.constant dense<0.000000e+00> : vector<8xf32>
    %55 = vector.multi_reduction <add>, %54, %cst_24 [1] : vector<8x128xf32> to vector<8xf32>
    %56 = vector.shape_cast %55 : vector<8xf32> to vector<8x1xf32>
    %57 = vector.broadcast %2 : f32 to vector<8x1xf32>
    %58 = arith.mulf %56, %57 : vector<8x1xf32>
    %cst_25 = arith.constant 9.99999974E-6 : f32
    %59 = vector.broadcast %cst_25 : f32 to vector<8x1xf32>
    %60 = arith.addf %58, %59 : vector<8x1xf32>
    %61 = math.rsqrt %60 : vector<8x1xf32>
    %62 = arith.mulf %42, %61 : vector<8x1xf32>
    %63 = vector.broadcast %62 : vector<8x1xf32> to vector<8x128xf32>
    %64 = arith.mulf %53, %63 : vector<8x128xf32>
    %65 = vector.broadcast %43 : vector<8x1xf32> to vector<8x128xf32>
    %66 = arith.addf %64, %65 : vector<8x128xf32>
    %cst_26 = arith.constant 1.000000e-01 : f32
    %67 = vector.broadcast %cst_26 : f32 to vector<8x128xf32>
    %68 = arith.mulf %67, %66 : vector<8x128xf32>
    %69 = arith.maximumf %66, %68 : vector<8x128xf32>
    %c0_27 = arith.constant 0 : index
    %c0_28 = arith.constant 0 : index
    %70 = vector.load %arg9[%c0_27, %c0_28] : memref<4x8xf32, #tpu.memory_space<vmem>>, vector<4x8xf32>
    %cst_29 = arith.constant dense<0.000000e+00> : vector<4x128xf32>
    %71 = tpu.matmul %70, %69, %cst_29 {dimension_numbers = #tpu.dot_dimension_numbers<[1], [0], [0], [1], [0, 0, 1, 1], [], []>} : vector<4x8xf32>, vector<8x128xf32>, vector<4x128xf32> -> vector<4x128xf32>
    %c0_30 = arith.constant 0 : index
    %c0_31 = arith.constant 0 : index
    %72 = vector.load %arg10[%c0_30, %c0_31] : memref<4x128xf32, #tpu.memory_space<vmem>>, vector<4x128xf32>
    tpu.vector_store %arg10[%c0_30, %c0_31], %71 {strides = array<i32>} : memref<4x128xf32, #tpu.memory_space<vmem>>, vector<4x128xf32>,
    return
  }
}

</mosaic_0001>

<bundles_post_ra>
// kernel: tpu_custom_call.1
= control target key start
LH: loop header
LB: loop body
LE: loop exit
PB: predicated region body
PF: predicated region fallthrough
CT: control target
= control target key end

     0   :  { %vm62_vm0 = vcmask 261120   ;;  %s846_s0 = inlined_call_operand.<no memory space> [shape: s32[1], index: 0, kind: input, shape index: {}]   ;;  %s847_s1 = inlined_call_operand.<no memory space> [shape: f32[1], index: 1, kind: input, shape index: {}]   ;;  %s848_s2 = inlined_call_operand.vmem [shape: f32[128,32], index: 2, kind: input, shape index: {}]   ;;  %s849_s3 = inlined_call_operand.vmem [shape: f32[16,32], index: 3, kind: input, shape index: {}]   ;;  %s850_s4 = inlined_call_operand.vmem [shape: f32[16,1], index: 4, kind: input, shape index: {}]   ;;  %s851_s5 = inlined_call_operand.vmem [shape: f32[16,1], index: 5, kind: input, shape index: {}]   ;;  %s852_s6 = inlined_call_operand.vmem [shape: f32[8,16], index: 6, kind: input, shape index: {}]   ;;  %s853_s7 = inlined_call_operand.vmem [shape: f32[8,1], index: 7, kind: input, shape index: {}]   ;;  %s854_s8 = inlined_call_operand.vmem [shape: f32[8,1], index: 8, kind: input, shape index: {}]   ;;  %s855_s9 = inlined_call_operand.vmem [shape: f32[4,8], index: 9, kind: input, shape index: {}]   ;;  %s856_s10 = inlined_call_operand.hbm [shape: f32[4,128], index: 10, kind: output, shape index: {}]  }
   0x1   :  { %v38_v0 = vld [vmem:[%s848_s2] sm:$0xff]  ;;  %v39_v1 = vld [vmem:[%s848_s2 + $0x8] sm:$0xff]  ;;  %v40_v2 = vld [vmem:[%s848_s2 + $0x10] sm:$0xff] }
   0x2   :  { %v538_v3 = vpack.c.bf16 %v39_v1, %v38_v0  ;;  %vm698_vm1 = vmpackc.low %vm62_vm0, %vm62_vm0  ;;  %v41_v5 = vld [vmem:[%s848_s2 + $0x18] sm:$0xff]  ;;  %v60_v7 = vld [vmem:[%s849_s3] sm:$0xff] }
   0x3   :  { %v544_v6 = vpack.c.bf16 %v41_v5, %v40_v2  ;;  %v42_v8 = vld [vmem:[%s848_s2 + $0x20] sm:$0xff]  ;;  %v43_v9 = vld [vmem:[%s848_s2 + $0x28] sm:$0xff]  ;;  %523 = vmatprep.mubr.msk.f32.mxu0 %vm62_vm0, %v60_v7 }
   0x4   :  { %540 = vmatprep.subr.msk.bf16.mxu0 %vm698_vm1, %v538_v3 }
   0x5   :  { %543 = vmatpush3.bf16.xpose.msk.msra.mxu0 %vm698_vm1, %v538_v3 }
   0x6   :  { %546 = vmatprep.subr.msk.bf16.mxu0 %vm698_vm1, %v544_v6 }
   0x7   :  { %17 = vsyncpa [#allocation5], 0  ;;  %v550_v10 = vpack.c.bf16 %v43_v9, %v42_v8  ;;  %v44_v11 = vld [vmem:[%s848_s2 + $0x30] sm:$0xff]  ;;  %v45_v12 = vld [vmem:[%s848_s2 + $0x38] sm:$0xff]  ;;  %v56_v29 = vlaneseq  ;;  %v784_v30 = vstv %s847_s1  ;;  %v58_v32 = vstv %s846_s0  ;;  %s631_s21 = smov [#allocation4]  }
   0x8   :  { %v556_v13 = vpack.c.bf16 %v45_v12, %v44_v11  ;;  %v46_v14 = vld [vmem:[%s848_s2 + $0x40] sm:$0xff]  ;;  %v47_v15 = vld [vmem:[%s848_s2 + $0x48] sm:$0xff]  ;;  %v48_v17 = vld [vmem:[%s848_s2 + $0x50] sm:$0xff]  ;;  %v627_v44 = vmov 0   ;;  %v628_v59 = vmov 0.0|0.0   ;;  %vm629_vm3 = vmmov 0  }
   0x9   :  { %v562_v16 = vpack.c.bf16 %v47_v15, %v46_v14  ;;  %v49_v18 = vld [vmem:[%s848_s2 + $0x58] sm:$0xff]  ;;  %v50_v20 = vld [vmem:[%s848_s2 + $0x60] sm:$0xff]  ;;  %v51_v21 = vld [vmem:[%s848_s2 + $0x68] sm:$0xff]  ;;  %v57_v31 = vand.u32 127, %v56_v29  ;;  %595 = vset.pattern.permute.xlu0 %v627_v44  ;;  %596 = vset.pattern.permute.xlu1 %v627_v44  ;;  %v630_v60 = vmov 0.0   ;;  %vm254_vm5 = vcmask 130048  }
   0xa   :  { %v568_v19 = vpack.c.bf16 %v49_v18, %v48_v17  ;;  %v574_v22 = vpack.c.bf16 %v51_v21, %v50_v20  ;;  %v52_v23 = vld [vmem:[%s848_s2 + $0x70] sm:$0xff]  ;;  %v53_v24 = vld [vmem:[%s848_s2 + $0x78] sm:$0xff]  ;;  %v61_v26 = vld [vmem:[%s849_s3 + $0x8] sm:$0xff]  ;;  %586 = vmatprep.subr.bf16.mxu1 %v628_v59  ;;  %530 = vmatprep.mubr.msk.f32.mxu1 %vm629_vm3, %v630_v60  ;;  %vm357_vm6 = vcmask 64512   ;;  %s438_s22 = sshll.u32 %s631_s21, 4  ;;  %s439_s22 = int_to_ptr.vmem [resolvable:$true] %s438_s22 }
   0xb   :  { %v580_v25 = vpack.c.bf16 %v53_v24, %v52_v23  ;;  %vm790_vm2 = vcmp.lt.s32.totalorder %v57_v31, %v58_v32  ;;  %v192_v51 = vld [vmem:[%s850_s4] sm:$0xff]  ;;  %v193_v54 = vld [vmem:[%s850_s4 + $0x8] sm:$0xff]  ;;  %p608_p1 = scmp.lt.s32.totalorder %s439_s22, %s439_s22 }
   0xc   :  { %v194_v57 = vld [vmem:[%s851_s5] sm:$0xff]  ;;  %v195_v58 = vld [vmem:[%s851_s5 + $0x8] sm:$0xff]  ;;  %vm588_vm4 = vmpackc.low %vm790_vm2, %vm790_vm2 }
   0xd   :  { %549 = vmatpush3.bf16.xpose.msk.msra.mxu0 %vm698_vm1, %v544_v6  ;;  %v329_v18 = vld [vmem:[%s854_s8] sm:$0xff] }
   0xe   :  { %552 = vmatprep.subr.msk.bf16.mxu0 %vm698_vm1, %v550_v10  ;;  %v356_v32 = vld [vmem:[%s855_s9] sm:$0xf] }
  0x15   :  { %555 = vmatpush3.bf16.xpose.msk.msra.mxu0 %vm698_vm1, %v550_v10  ;;  %v253_v10 = vld [vmem:[%s852_s6] sm:$0xff] }
  0x16   :  { %558 = vmatprep.subr.msk.bf16.mxu0 %vm698_vm1, %v556_v13 }
  0x1d   :  { %561 = vmatpush3.bf16.xpose.msk.msra.mxu0 %vm698_vm1, %v556_v13 }
  0x1e   :  { %564 = vmatprep.subr.msk.bf16.mxu0 %vm698_vm1, %v562_v16 }
  0x25   :  { %567 = vmatpush3.bf16.xpose.msk.msra.mxu0 %vm698_vm1, %v562_v16 }
  0x26   :  { %570 = vmatprep.subr.msk.bf16.mxu0 %vm698_vm1, %v568_v19 }
  0x2d   :  { %573 = vmatpush3.bf16.xpose.msk.msra.mxu0 %vm698_vm1, %v568_v19 }
  0x2e   :  { %576 = vmatprep.subr.msk.bf16.mxu0 %vm698_vm1, %v574_v22 }
  0x35   :  { %579 = vmatpush3.bf16.xpose.msk.msra.mxu0 %vm698_vm1, %v574_v22  ;;  %v328_v22 = vld [vmem:[%s853_s7] sm:$0xff]  ;;  %s603_s7 = scalar_lea.vmem %s439_s22, 64 }
  0x36   :  { %582 = vmatprep.subr.msk.bf16.mxu0 %vm698_vm1, %v580_v25  ;;  %p604_p0 = scmp.ne.s32.totalorder %s439_s22, %s603_s7  ;;  %p609_p2 = scmp.lt.s32.totalorder %s603_s7, %s603_s7 }
  0x38   :  { %p610_p3 = por %p609_p2, %p608_p1 }
  0x3a   :  { %p611_p4 = pnand %p610_p3, %p604_p0 }
  0x3d   :  { %585 = vmatpush3.bf16.xpose.msk.msra.mxu0 %vm698_vm1, %v580_v25 }
  0x44   :  { %524 = vmatmul.mubr.msk.f32.vlgmr.msra.gmra.mrb[0].mxu0 %vm62_vm0, %v61_v26 }
 0x117   :  { %v525_v27 = vpop.f32.mrb[0].mxu0 }
 0x118   :  { %v183_v28 = vpop.f32.mrb[1].mxu0 }
 0x119   :  { %196 = vadd.xlane.f32.xlu0 %v183_v28 }
 0x11d   :  { %198 = vadd.xlane.f32.xlu0 %v525_v27 }
 0x1a6   :  { %v197_v33 = vpop.xlane.xlu0 %196 }
 0x1a7   :  { %v201_v34 = vmul.f32 %v784_v30, %v197_v33 }
 0x1a9   :  { %v203_v36 = vsub.f32 %v183_v28, %v201_v34 }
 0x1aa   :  { %v199_v37 = vpop.xlane.xlu0 %198 }
 0x1ab   :  { %v202_v38 = vmul.f32 %v784_v30, %v199_v37  ;;  %v207_v39 = vsel %vm790_vm2, %v203_v36, 0.0 }
 0x1ac   :  { %v209_v40 = vmul.f32 %v207_v39, %v207_v39 }
 0x1ad   :  { %v204_v41 = vsub.f32 %v525_v27, %v202_v38 }
 0x1ae   :  { %211 = vadd.xlane.f32.xlu1 %v209_v40 }
 0x1af   :  { %v208_v42 = vsel %vm790_vm2, %v204_v41, 0.0 }
 0x1b0   :  { %v210_v43 = vmul.f32 %v208_v42, %v208_v42 }
 0x1b2   :  { %213 = vadd.xlane.f32.xlu1 %v210_v43 }
 0x23b   :  { %v212_v45 = vpop.xlane.xlu1 %211 }
 0x23c   :  { %v215_v46 = vmul.f32 %v212_v45, %v784_v30 }
 0x23e   :  { %v217_v47 = vadd.f32 1e-05, %v215_v46 }
 0x23f   :  { %v214_v48 = vpop.xlane.xlu1 %213 }
 0x240   :  { %597 = vrsqrt.f32 %v217_v47  ;;  %v216_v49 = vmul.f32 %v214_v48, %v784_v30 }
 0x242   :  { %v218_v50 = vadd.f32 1e-05, %v216_v49 }
 0x244   :  { %599 = vrsqrt.f32 %v218_v50 }
 0x24a   :  { %v598_v52 = vpop.eup %597 }
 0x24b   :  { %v221_v53 = vmul.f32 %v598_v52, %v192_v51 }
 0x24d   :  { %225 = vperm.xlu0 %595, %v221_v53  }
 0x24e   :  { %v600_v55 = vpop.eup %599 }
 0x24f   :  { %v222_v56 = vmul.f32 %v600_v55, %v193_v54 }
 0x251   :  { %230 = vperm.xlu1 %596, %v222_v56  }
 0x255   :  { %237 = vperm.xlu1 %596, %v194_v57  }
 0x259   :  { %242 = vperm.xlu1 %596, %v195_v58  }
 0x2cc   :  { %v226_v61 = vpop.permute.xlu0 %225 }
 0x2cd   :  { %v233_v63 = vmul.f32 %v226_v61, %v207_v39 }
 0x2d0   :  { %v231_v62 = vpop.permute.xlu1 %230 }
 0x2d1   :  { %v234_v2 = vmul.f32 %v231_v62, %v208_v42 }
 0x2d4   :  { %v238_v0 = vpop.permute.xlu1 %237 }
 0x2d5   :  { %v245_v1 = vadd.f32 %v238_v0, %v233_v63 }
 0x2d7   :  { %v247_v4 = vmul.f32 0.1, %v245_v1 }
 0x2d8   :  { %v243_v3 = vpop.permute.xlu1 %242 }
 0x2d9   :  { %v246_v5 = vadd.f32 %v243_v3, %v234_v2  ;;  %v249_v7 = vmax.f32 %v245_v1, %v247_v4 }
 0x2db   :  { %v248_v6 = vmul.f32 0.1, %v246_v5 }
 0x2dd   :  { %v250_v8 = vmax.f32 %v246_v5, %v248_v6 }
 0x2df   :  { %v587_v9 = vpack.c.bf16 %v250_v8, %v249_v7 }
 0x2e1   :  { %589 = vmatpush3.bf16.msk.msra.mxu1 %vm588_vm4, %v587_v9 }
 0x2e2   :  { %533 = vmatprep.subr.mxu1 %v630_v60 }
 0x2e4   :  { %531 = vmatmul.mubr.msk.f32.vlgmr.msra.gmra.mrb[0].mxu1 %vm254_vm5, %v253_v10 }
 0x2e5   :  { %535 = vmatprep.mubr.msk.f32.mxu1 %vm629_vm3, %v630_v60 }
 0x3b7   :  { %v324_v11 = vpop.f32.mrb[0].mxu1 }
 0x3b8   :  { %330 = vadd.xlane.f32.xlu1 %v324_v11  ;;  %v532_v12 = vpop.f32.mrb[1].mxu1 }
 0x445   :  { %v331_v13 = vpop.xlane.xlu1 %330 }
 0x446   :  { %v332_v14 = vmul.f32 %v331_v13, %v784_v30 }
 0x448   :  { %v333_v15 = vsub.f32 %v324_v11, %v332_v14 }
 0x44a   :  { %v334_v16 = vsel %vm790_vm2, %v333_v15, 0.0 }
 0x44b   :  { %v335_v17 = vmul.f32 %v334_v16, %v334_v16 }
 0x44d   :  { %336 = vadd.xlane.f32.xlu0 %v335_v17 }
 0x463   :  { %350 = vperm.xlu0 %595, %v329_v18  }
 0x4da   :  { %v337_v19 = vpop.xlane.xlu0 %336 }
 0x4db   :  { %v338_v20 = vmul.f32 %v337_v19, %v784_v30 }
 0x4dd   :  { %v339_v21 = vadd.f32 1e-05, %v338_v20 }
 0x4df   :  { %601 = vrsqrt.f32 %v339_v21 }
 0x4e2   :  { %v351_v27 = vpop.permute.xlu0 %350 }
 0x4e9   :  { %v602_v23 = vpop.eup %601 }
 0x4ea   :  { %v341_v24 = vmul.f32 %v602_v23, %v328_v22 }
 0x4ec   :  { %344 = vperm.xlu1 %596, %v341_v24  }
 0x56b   :  { %v345_v25 = vpop.permute.xlu1 %344 }
 0x56c   :  { %v347_v26 = vmul.f32 %v345_v25, %v334_v16 }
 0x56e   :  { %v353_v28 = vadd.f32 %v351_v27, %v347_v26 }
 0x570   :  { %v354_v29 = vmul.f32 0.1, %v353_v28 }
 0x572   :  { %v355_v31 = vmax.f32 %v353_v28, %v354_v29 }
 0x574   :  { %534 = vmatpush3.msra.mxu1 %v355_v31 }
 0x575   :  { %536 = vmatmul.mubr.msk.f32.vlgmr.msra.gmra.mrb[2].mxu1 %vm357_vm6, %v356_v32 }
 0x648   :  { %v427_v30 = vpop.f32.mrb[2].mxu1 }
 0x649   :  { %431 = vst [vmem:[#allocation4] sm:$0xf] %v427_v30  ;;  %v537_v33 = vpop.f32.mrb[3].mxu1 }
 0x64a   :  { %614 = shalt.err (!%p611_p4)
}
 0x64b   :  { %s615_s9 = scalar_lea.hbm %s856_s10, 64 }
 0x64c   :  { %p616_p5 = scmp.ne.s32.totalorder %s856_s10, %s615_s9  ;;  %p619_p6 = scmp.lt.u32.totalorder %s615_s9, %s856_s10 }
 0x64e   :  { %p621_p7 = pnand %p619_p6, %p616_p5 }
 0x650   :  { %624 = shalt.err (!%p621_p7)
}
 0x651   :  { %441 = dma.vmem_to_hbm [thread:$0]  %s439_s22, 64, %s856_s10, [#allocation5]  }
 0x652   :  { %625 = dma.done.wait [#allocation5], 64  }
 0x653   :  { %626 = vsyncadd [#allocation5], 4294967232 }
 0x654   :  { %445 = vsyncpa [#allocation5], 1 }

</bundles_post_ra>
